<compile_context>
chip_gen: v7x
topology: tpu7x:2x2x1
jax: 0.10.0
libtpu: 0.0.40
codegen_flags: <defaults>
</compile_context>

<pallas_src>
import jax
import jax.numpy as jnp
from jax.experimental import pallas as pl
from jax.experimental.pallas import tpu as pltpu

DENSE_DIM = 128
PAD_DIM = 128               # lane-dense width for head logits / output slab
POSITION_ACTIONS = 51
ROTATION_ACTIONS = 24
NEG_BIAS = -1e30            # padded logit columns -> exactly 0 probability
_BATCH_BLOCK = 512          # row block for the gridded (large-batch) path
_HEAD_BY_ACT = {0: "panel", 1: "position", 2: "position", 3: "rotation"}


def _actor_mlp_kernel(x_ref, w1_ref, b1_ref, w2_ref, b2_ref, w3_ref, b3_ref,
                      w4_ref, b4_ref, wo_ref, bo_ref, out_ref):
    """Fused 4x(Linear+ReLU) trunk -> head Linear -> row-wise softmax (128 lanes)."""
    # In-kernel bf16 cast of the raw f32 (rows, state_dim) input; the first-layer
    # weight keeps its true (state_dim, 128) shape so no feature padding is needed.
    h = x_ref[...].astype(jnp.bfloat16)
    for w_ref, b_ref in ((w1_ref, b1_ref), (w2_ref, b2_ref),
                         (w3_ref, b3_ref), (w4_ref, b4_ref)):
        acc = jnp.dot(h, w_ref[...], preferred_element_type=jnp.float32) + b_ref[...]
        h = jnp.maximum(acc, 0.0).astype(jnp.bfloat16)        # ReLU, bf16 back to MXU
    logits = jnp.dot(h, wo_ref[...], preferred_element_type=jnp.float32) + bo_ref[...]
    # Numerically-stable softmax; padded columns carry a -1e30 bias so exp -> 0 exactly.
    m = jnp.max(logits, axis=-1, keepdims=True)
    e = jnp.exp(logits - m)
    denom = jnp.sum(e, axis=-1, keepdims=True)
    out_ref[...] = (e / denom).astype(out_ref.dtype)          # exact divide: rows sum to 1


def actor_forward(x, params, act=0, out_dtype=jnp.float32):
    """JAX/Pallas equivalent of Actor.forward(inputs, act). Returns (B, n_out)."""
    head = _HEAD_BY_ACT[act]
    wo, bo = params[head + "_w"], params[head + "_b"]
    n_out = params["head_dims"][head]

    x = x.astype(jnp.float32)
    B, F = x.shape

    weight_args = (params["w1"], params["b1"], params["w2"], params["b2"],
                   params["w3"], params["b3"], params["w4"], params["b4"], wo, bo)

    if B > _BATCH_BLOCK:
        # Large-batch path: 1-D grid over 512-row blocks, parallel across TensorCores.
        n_blk = pl.cdiv(B, _BATCH_BLOCK)
        Bp = n_blk * _BATCH_BLOCK
        xp = jnp.pad(x, ((0, Bp - B), (0, 0))) if Bp != B else x
        x_spec = pl.BlockSpec((_BATCH_BLOCK, F), lambda i: (i, 0))
        out_spec = pl.BlockSpec((_BATCH_BLOCK, PAD_DIM), lambda i: (i, 0))
        w_specs = [pl.BlockSpec(a.shape, lambda i: (0, 0)) for a in weight_args]
        out = pl.pallas_call(
            _actor_mlp_kernel,
            out_shape=jax.ShapeDtypeStruct((Bp, PAD_DIM), out_dtype),
            grid=(n_blk,),
            in_specs=[x_spec] + w_specs,
            out_specs=out_spec,
            compiler_params=pltpu.CompilerParams(
                dimension_semantics=("parallel",)),
        )(xp, *weight_args)
    else:
        # Small-batch path: no grid, everything resident in VMEM for one shot.
        vmem = pl.BlockSpec(memory_space=pltpu.MemorySpace.VMEM)
        out = pl.pallas_call(
            _actor_mlp_kernel,
            out_shape=jax.ShapeDtypeStruct((B, PAD_DIM), out_dtype),
            in_specs=[vmem] * (1 + len(weight_args)),
            out_specs=vmem,
        )(x, *weight_args)

    return out[:B, :n_out]


def init_actor_params(key, num_components, num_panels):
    """nn.Linear-style init (U(-1/sqrt(fan_in), +1/sqrt(fan_in))), packed into
    kernel-friendly layouts: bf16 (in, out) weights, f32 (1, 128) biases.  The first
    layer keeps its true (state_dim, 128) shape; heads are zero-padded to 128 output
    lanes with a -1e30 bias on the padded columns."""
    state_dim = num_components * 4
    panel_actions = 2 * num_panels

    def linear(k, fan_in, fan_out):
        kw, kb = jax.random.split(k)
        bound = 1.0 / jnp.sqrt(float(fan_in))
        w = jax.random.uniform(kw, (fan_in, fan_out), jnp.float32, -bound, bound)
        b = jax.random.uniform(kb, (fan_out,), jnp.float32, -bound, bound)
        return w, b

    def pack_trunk(w, b):
        return w.astype(jnp.bfloat16), b.reshape(1, -1)

    def pack_head(w, b):
        wp = jnp.zeros((DENSE_DIM, PAD_DIM), jnp.float32).at[:, : w.shape[1]].set(w)
        bp = jnp.full((1, PAD_DIM), NEG_BIAS, jnp.float32).at[0, : b.shape[0]].set(b)
        return wp.astype(jnp.bfloat16), bp

    keys = jax.random.split(key, 7)
    w1, b1 = pack_trunk(*linear(keys[0], state_dim, DENSE_DIM))
    w2, b2 = pack_trunk(*linear(keys[1], DENSE_DIM, DENSE_DIM))
    w3, b3 = pack_trunk(*linear(keys[2], DENSE_DIM, DENSE_DIM))
    w4, b4 = pack_trunk(*linear(keys[3], DENSE_DIM, DENSE_DIM))
    pos_w, pos_b = pack_head(*linear(keys[4], DENSE_DIM, POSITION_ACTIONS))
    rot_w, rot_b = pack_head(*linear(keys[5], DENSE_DIM, ROTATION_ACTIONS))
    pan_w, pan_b = pack_head(*linear(keys[6], DENSE_DIM, panel_actions))

    return dict(w1=w1, b1=b1, w2=w2, b2=b2, w3=w3, b3=b3, w4=w4, b4=b4,
                position_w=pos_w, position_b=pos_b,
                rotation_w=rot_w, rotation_b=rot_b,
                panel_w=pan_w, panel_b=pan_b,
                head_dims={"panel": panel_actions,
                           "position": POSITION_ACTIONS,
                           "rotation": ROTATION_ACTIONS})


def _reference_forward(x, params, act):
    """Pure-JAX reference mirroring the kernel's math (bf16 weights, f32 accumulate,
    exact softmax)."""
    head = _HEAD_BY_ACT[act]
    h = x.astype(jnp.bfloat16)
    for i in (1, 2, 3, 4):
        acc = jnp.dot(h, params[f"w{i}"], preferred_element_type=jnp.float32) + params[f"b{i}"]
        h = jnp.maximum(acc, 0.0).astype(jnp.bfloat16)
    logits = jnp.dot(h, params[head + "_w"],
                     preferred_element_type=jnp.float32) + params[head + "_b"]
    probs = jax.nn.softmax(logits, axis=-1)
    return probs[:, : params["head_dims"][head]]


if __name__ == "__main__":
    num_components = 4      # -> state_dim = 16
    num_panels = 3          # -> panel_actions = 6

    key = jax.random.PRNGKey(0)
    k_params, k_x, k_big = jax.random.split(key, 3)
    params = init_actor_params(k_params, num_components, num_panels)

    ok = True

    # Small-batch path (no grid, whole-array VMEM blocks) — all four heads.
    x = jax.random.normal(k_x, (2, num_components * 4), dtype=jnp.float32)
    for act in (0, 1, 2, 3):
        out = jax.block_until_ready(actor_forward(x, params, act=act))
        ref = _reference_forward(x, params, act)
        ok &= bool(jnp.allclose(out, ref, atol=2e-3, rtol=2e-3))
        ok &= bool(jnp.allclose(jnp.sum(out, axis=-1), 1.0, atol=1e-3))

    # Large-batch path (1-D parallel grid over 512-row blocks; 640 rows -> 2 blocks,
    # also exercises the trailing-row-padding path).
    xb = jax.random.normal(k_big, (640, num_components * 4), dtype=jnp.float32)
    out_b = jax.block_until_ready(actor_forward(xb, params, act=1))
    ref_b = _reference_forward(xb, params, 1)
    ok &= bool(jnp.allclose(out_b, ref_b, atol=2e-3, rtol=2e-3))
    ok &= bool(jnp.allclose(jnp.sum(out_b, axis=-1), 1.0, atol=1e-3))

    print("KERNEL_OK" if ok else "KERNEL_MISMATCH")
</pallas_src>

<mosaic_0001>
module attributes {stable_mosaic.version = 11 : i64} {
  func.func @_actor_mlp_kernel(%arg0: memref<2x16xf32, #tpu.memory_space<vmem>>, %arg1: memref<16x128xbf16, #tpu.memory_space<vmem>>, %arg2: memref<1x128xf32, #tpu.memory_space<vmem>>, %arg3: memref<128x128xbf16, #tpu.memory_space<vmem>>, %arg4: memref<1x128xf32, #tpu.memory_space<vmem>>, %arg5: memref<128x128xbf16, #tpu.memory_space<vmem>>, %arg6: memref<1x128xf32, #tpu.memory_space<vmem>>, %arg7: memref<128x128xbf16, #tpu.memory_space<vmem>>, %arg8: memref<1x128xf32, #tpu.memory_space<vmem>>, %arg9: memref<128x128xbf16, #tpu.memory_space<vmem>>, %arg10: memref<1x128xf32, #tpu.memory_space<vmem>>, %arg11: memref<2x128xf32, #tpu.memory_space<vmem>>) attributes {dimension_semantics = [], scalar_prefetch = 0 : i64, scratch_operands = 0 : i64, tpu.core_type = #tpu.core_type<tc>} {
    %c0 = arith.constant 0 : index
    %c0_0 = arith.constant 0 : index
    %0 = vector.load %arg0[%c0, %c0_0] : memref<2x16xf32, #tpu.memory_space<vmem>>, vector<2x16xf32>
    %1 = arith.truncf %0 : vector<2x16xf32> to vector<2x16xbf16>
    %c0_1 = arith.constant 0 : index
    %c0_2 = arith.constant 0 : index
    %2 = vector.load %arg1[%c0_1, %c0_2] : memref<16x128xbf16, #tpu.memory_space<vmem>>, vector<16x128xbf16>
    %cst = arith.constant dense<0.000000e+00> : vector<2x128xf32>
    %3 = tpu.matmul %1, %2, %cst {dimension_numbers = #tpu.dot_dimension_numbers<[1], [0], [0], [1], [0, 0, 1, 1], [], []>} : vector<2x16xbf16>, vector<16x128xbf16>, vector<2x128xf32> -> vector<2x128xf32>
    %c0_3 = arith.constant 0 : index
    %c0_4 = arith.constant 0 : index
    %4 = vector.load %arg2[%c0_3, %c0_4] : memref<1x128xf32, #tpu.memory_space<vmem>>, vector<1x128xf32>
    %5 = vector.broadcast %4 : vector<1x128xf32> to vector<2x128xf32>
    %6 = arith.addf %3, %5 : vector<2x128xf32>
    %cst_5 = arith.constant 0.000000e+00 : f32
    %7 = vector.broadcast %cst_5 : f32 to vector<2x128xf32>
    %8 = arith.maximumf %6, %7 : vector<2x128xf32>
    %9 = arith.truncf %8 : vector<2x128xf32> to vector<2x128xbf16>
    %c0_6 = arith.constant 0 : index
    %c0_7 = arith.constant 0 : index
    %10 = vector.load %arg3[%c0_6, %c0_7] : memref<128x128xbf16, #tpu.memory_space<vmem>>, vector<128x128xbf16>
    %cst_8 = arith.constant dense<0.000000e+00> : vector<2x128xf32>
    %11 = tpu.matmul %9, %10, %cst_8 {dimension_numbers = #tpu.dot_dimension_numbers<[1], [0], [0], [1], [0, 0, 1, 1], [], []>} : vector<2x128xbf16>, vector<128x128xbf16>, vector<2x128xf32> -> vector<2x128xf32>
    %c0_9 = arith.constant 0 : index
    %c0_10 = arith.constant 0 : index
    %12 = vector.load %arg4[%c0_9, %c0_10] : memref<1x128xf32, #tpu.memory_space<vmem>>, vector<1x128xf32>
    %13 = vector.broadcast %12 : vector<1x128xf32> to vector<2x128xf32>
    %14 = arith.addf %11, %13 : vector<2x128xf32>
    %cst_11 = arith.constant 0.000000e+00 : f32
    %15 = vector.broadcast %cst_11 : f32 to vector<2x128xf32>
    %16 = arith.maximumf %14, %15 : vector<2x128xf32>
    %17 = arith.truncf %16 : vector<2x128xf32> to vector<2x128xbf16>
    %c0_12 = arith.constant 0 : index
    %c0_13 = arith.constant 0 : index
    %18 = vector.load %arg5[%c0_12, %c0_13] : memref<128x128xbf16, #tpu.memory_space<vmem>>, vector<128x128xbf16>
    %cst_14 = arith.constant dense<0.000000e+00> : vector<2x128xf32>
    %19 = tpu.matmul %17, %18, %cst_14 {dimension_numbers = #tpu.dot_dimension_numbers<[1], [0], [0], [1], [0, 0, 1, 1], [], []>} : vector<2x128xbf16>, vector<128x128xbf16>, vector<2x128xf32> -> vector<2x128xf32>
    %c0_15 = arith.constant 0 : index
    %c0_16 = arith.constant 0 : index
    %20 = vector.load %arg6[%c0_15, %c0_16] : memref<1x128xf32, #tpu.memory_space<vmem>>, vector<1x128xf32>
    %21 = vector.broadcast %20 : vector<1x128xf32> to vector<2x128xf32>
    %22 = arith.addf %19, %21 : vector<2x128xf32>
    %cst_17 = arith.constant 0.000000e+00 : f32
    %23 = vector.broadcast %cst_17 : f32 to vector<2x128xf32>
    %24 = arith.maximumf %22, %23 : vector<2x128xf32>
    %25 = arith.truncf %24 : vector<2x128xf32> to vector<2x128xbf16>
    %c0_18 = arith.constant 0 : index
    %c0_19 = arith.constant 0 : index
    %26 = vector.load %arg7[%c0_18, %c0_19] : memref<128x128xbf16, #tpu.memory_space<vmem>>, vector<128x128xbf16>
    %cst_20 = arith.constant dense<0.000000e+00> : vector<2x128xf32>
    %27 = tpu.matmul %25, %26, %cst_20 {dimension_numbers = #tpu.dot_dimension_numbers<[1], [0], [0], [1], [0, 0, 1, 1], [], []>} : vector<2x128xbf16>, vector<128x128xbf16>, vector<2x128xf32> -> vector<2x128xf32>
    %c0_21 = arith.constant 0 : index
    %c0_22 = arith.constant 0 : index
    %28 = vector.load %arg8[%c0_21, %c0_22] : memref<1x128xf32, #tpu.memory_space<vmem>>, vector<1x128xf32>
    %29 = vector.broadcast %28 : vector<1x128xf32> to vector<2x128xf32>
    %30 = arith.addf %27, %29 : vector<2x128xf32>
    %cst_23 = arith.constant 0.000000e+00 : f32
    %31 = vector.broadcast %cst_23 : f32 to vector<2x128xf32>
    %32 = arith.maximumf %30, %31 : vector<2x128xf32>
    %33 = arith.truncf %32 : vector<2x128xf32> to vector<2x128xbf16>
    %c0_24 = arith.constant 0 : index
    %c0_25 = arith.constant 0 : index
    %34 = vector.load %arg9[%c0_24, %c0_25] : memref<128x128xbf16, #tpu.memory_space<vmem>>, vector<128x128xbf16>
    %cst_26 = arith.constant dense<0.000000e+00> : vector<2x128xf32>
    %35 = tpu.matmul %33, %34, %cst_26 {dimension_numbers = #tpu.dot_dimension_numbers<[1], [0], [0], [1], [0, 0, 1, 1], [], []>} : vector<2x128xbf16>, vector<128x128xbf16>, vector<2x128xf32> -> vector<2x128xf32>
    %c0_27 = arith.constant 0 : index
    %c0_28 = arith.constant 0 : index
    %36 = vector.load %arg10[%c0_27, %c0_28] : memref<1x128xf32, #tpu.memory_space<vmem>>, vector<1x128xf32>
    %37 = vector.broadcast %36 : vector<1x128xf32> to vector<2x128xf32>
    %38 = arith.addf %35, %37 : vector<2x128xf32>
    %cst_29 = arith.constant dense<0xFF800000> : vector<2xf32>
    %39 = vector.multi_reduction <maximumf>, %38, %cst_29 [1] : vector<2x128xf32> to vector<2xf32>
    %40 = vector.shape_cast %39 : vector<2xf32> to vector<2x1xf32>
    %41 = vector.broadcast %40 : vector<2x1xf32> to vector<2x128xf32>
    %42 = arith.subf %38, %41 : vector<2x128xf32>
    %43 = math.exp %42 : vector<2x128xf32>
    %cst_30 = arith.constant dense<0.000000e+00> : vector<2xf32>
    %44 = vector.multi_reduction <add>, %43, %cst_30 [1] : vector<2x128xf32> to vector<2xf32>
    %45 = vector.shape_cast %44 : vector<2xf32> to vector<2x1xf32>
    %46 = vector.broadcast %45 : vector<2x1xf32> to vector<2x128xf32>
    %47 = arith.divf %43, %46 : vector<2x128xf32>
    %c0_31 = arith.constant 0 : index
    %c0_32 = arith.constant 0 : index
    %48 = vector.load %arg11[%c0_31, %c0_32] : memref<2x128xf32, #tpu.memory_space<vmem>>, vector<2x128xf32>
    tpu.vector_store %arg11[%c0_31, %c0_32], %47 {strides = array<i32>} : memref<2x128xf32, #tpu.memory_space<vmem>>, vector<2x128xf32>,
    return
  }
}

</mosaic_0001>

<bundles_post_ra>
// kernel: tpu_custom_call.1
= control target key start
LH: loop header
LB: loop body
LE: loop exit
PB: predicated region body
PF: predicated region fallthrough
CT: control target
= control target key end

     0   :  { %16 = vsyncpa [#allocation3], 0  ;;  %s1267_s0 = inlined_call_operand.hbm [shape: f32[2,16], index: 0, kind: input, shape index: {}]   ;;  %s1268_s1 = inlined_call_operand.hbm [shape: bf16[16,128], index: 1, kind: input, shape index: {}]   ;;  %s1269_s2 = inlined_call_operand.vmem [shape: f32[1,128], index: 2, kind: input, shape index: {}]   ;;  %s1270_s3 = inlined_call_operand.hbm [shape: bf16[128,128], index: 3, kind: input, shape index: {}]   ;;  %s1271_s4 = inlined_call_operand.vmem [shape: f32[1,128], index: 4, kind: input, shape index: {}]   ;;  %s1272_s5 = inlined_call_operand.hbm [shape: bf16[128,128], index: 5, kind: input, shape index: {}]   ;;  %s1273_s6 = inlined_call_operand.vmem [shape: f32[1,128], index: 6, kind: input, shape index: {}]   ;;  %s1274_s7 = inlined_call_operand.hbm [shape: bf16[128,128], index: 7, kind: input, shape index: {}]   ;;  %s1275_s8 = inlined_call_operand.vmem [shape: f32[1,128], index: 8, kind: input, shape index: {}]   ;;  %s1276_s9 = inlined_call_operand.hbm [shape: bf16[128,128], index: 9, kind: input, shape index: {}]   ;;  %s1277_s10 = inlined_call_operand.vmem [shape: f32[1,128], index: 10, kind: input, shape index: {}]   ;;  %s1278_s11 = inlined_call_operand.hbm [shape: f32[2,128], index: 11, kind: output, shape index: {}]  }
   0x1   :  { %17 = vsyncpa [#allocation6], 0 }
   0x2   :  { %18 = vsyncpa [#allocation9], 0 }
   0x3   :  { %19 = vsyncpa [#allocation12], 0 }
   0x4   :  { %20 = vsyncpa [#allocation4], 0  ;;  %s1039_s17 = smov [#allocation5]   ;;  %s875_s21 = scalar_lea.hbm %s1268_s1, 128 }
   0x5   :  { %s36_s18 = sshll.u32 %s1039_s17, 4  ;;  %p876_p0 = scmp.ne.s32.totalorder %s1268_s1, %s875_s21  ;;  %s37_s18 = int_to_ptr.vmem [resolvable:$true] %s36_s18 }
   0x6   :  { %p879_p1 = scmp.lt.u32.totalorder %s875_s21, %s1268_s1 }
   0x8   :  { %p881_p2 = pnand %p879_p1, %p876_p0 }
   0xa   :  { %884 = shalt.err (!%p881_p2)
}
   0xb   :  { %s885_s26 = scalar_lea.vmem %s37_s18, 128  ;;  %p890_p4 = scmp.lt.s32.totalorder %s37_s18, %s37_s18 }
   0xc   :  { %p886_p3 = scmp.ne.s32.totalorder %s37_s18, %s885_s26  ;;  %p891_p5 = scmp.lt.s32.totalorder %s885_s26, %s885_s26 }
   0xe   :  { %p892_p6 = por %p891_p5, %p890_p4 }
  0x10   :  { %p893_p7 = pnand %p892_p6, %p886_p3 }
  0x12   :  { %896 = shalt.err (!%p893_p7)
}
  0x13   :  { %s1040_s27 = smov 64   ;;  %s1041_s28 = smov 4  }
  0x14   :  { %42 = dma.hbm_to_vmem [thread:$0]  %s1268_s1, 128, %s37_s18, [#allocation6], %s1040_s27, %s1040_s27, %s1041_s28  }
  0x15   :  { %s1042_s12 = smov [#allocation8]   ;;  %s1043_s14 = smov [#allocation2]  }
  0x16   :  { %s64_s13 = sshll.u32 %s1042_s12, 4  ;;  %s27_s15 = sshll.u32 %s1043_s14, 4  ;;  %s65_s13 = int_to_ptr.vmem [resolvable:$true] %s64_s13  ;;  %s28_s15 = int_to_ptr.vmem [resolvable:$true] %s27_s15 }
  0x17   :  { %s897_s19 = scalar_lea.hbm %s1272_s5, 1024 }
  0x18   :  { %p898_p8 = scmp.ne.s32.totalorder %s1272_s5, %s897_s19  ;;  %p901_p9 = scmp.lt.u32.totalorder %s897_s19, %s1272_s5 }
  0x1a   :  { %p903_p10 = pnand %p901_p9, %p898_p8 }
  0x1c   :  { %906 = shalt.err (!%p903_p10)
}
  0x1d   :  { %s907_s1 = scalar_lea.vmem %s65_s13, 1024  ;;  %p912_p12 = scmp.lt.s32.totalorder %s65_s13, %s65_s13 }
  0x1e   :  { %p908_p11 = scmp.ne.s32.totalorder %s65_s13, %s907_s1  ;;  %p913_p13 = scmp.lt.s32.totalorder %s907_s1, %s907_s1 }
  0x20   :  { %p914_p0 = por %p913_p13, %p912_p12 }
  0x22   :  { %p915_p1 = pnand %p914_p0, %p908_p11 }
  0x24   :  { %918 = shalt.err (!%p915_p1)
}
  0x25   :  { %70 = dma.hbm_to_vmem [thread:$0]  %s1272_s5, 1024, %s65_s13, [#allocation9], %s1040_s27, %s1040_s27, %s1041_s28  }
  0x26   :  { %s919_s29 = scalar_lea.hbm %s1267_s0, 32 }
  0x27   :  { %p920_p2 = scmp.ne.s32.totalorder %s1267_s0, %s919_s29  ;;  %p923_p3 = scmp.lt.u32.totalorder %s919_s29, %s1267_s0 }
  0x29   :  { %p925_p4 = pnand %p923_p3, %p920_p2 }
  0x2b   :  { %928 = shalt.err (!%p925_p4)
}
  0x2c   :  { %s929_s17 = scalar_lea.vmem %s28_s15, 32  ;;  %p934_p6 = scmp.lt.s32.totalorder %s28_s15, %s28_s15 }
  0x2d   :  { %p930_p5 = scmp.ne.s32.totalorder %s28_s15, %s929_s17  ;;  %p935_p7 = scmp.lt.s32.totalorder %s929_s17, %s929_s17 }
  0x2f   :  { %p936_p8 = por %p935_p7, %p934_p6 }
  0x31   :  { %p937_p9 = pnand %p936_p8, %p930_p5 }
  0x33   :  { %940 = shalt.err (!%p937_p9)
}
  0x34   :  { %30 = dma.hbm_to_vmem [thread:$0]  %s1267_s0, 32, %s28_s15, [#allocation3]  }
  0x35   :  { %s1044_s19 = smov [#allocation7]   ;;  %s1045_s21 = smov [#allocation10]  }
  0x36   :  { %s50_s20 = sshll.u32 %s1044_s19, 4  ;;  %s78_s22 = sshll.u32 %s1045_s21, 4  ;;  %s51_s20 = int_to_ptr.vmem [resolvable:$true] %s50_s20  ;;  %s79_s22 = int_to_ptr.vmem [resolvable:$true] %s78_s22 }
  0x37   :  { %s941_s18 = scalar_lea.hbm %s1270_s3, 1024 }
  0x38   :  { %p942_p10 = scmp.ne.s32.totalorder %s1270_s3, %s941_s18  ;;  %p945_p11 = scmp.lt.u32.totalorder %s941_s18, %s1270_s3 }
  0x3a   :  { %p947_p12 = pnand %p945_p11, %p942_p10 }
  0x3c   :  { %950 = shalt.err (!%p947_p12)
}
  0x3d   :  { %s951_s0 = scalar_lea.vmem %s51_s20, 1024  ;;  %p956_p0 = scmp.lt.s32.totalorder %s51_s20, %s51_s20 }
  0x3e   :  { %p952_p13 = scmp.ne.s32.totalorder %s51_s20, %s951_s0  ;;  %p957_p1 = scmp.lt.s32.totalorder %s951_s0, %s951_s0 }
  0x40   :  { %p958_p2 = por %p957_p1, %p956_p0 }
  0x42   :  { %p959_p3 = pnand %p958_p2, %p952_p13 }
  0x44   :  { %962 = shalt.err (!%p959_p3)
}
  0x45   :  { %56 = dma.hbm_to_vmem [thread:$0]  %s1270_s3, 1024, %s51_s20, [#allocation6], %s1040_s27, %s1040_s27, %s1041_s28  }
  0x46   :  { %s963_s16 = scalar_lea.hbm %s1274_s7, 1024 }
  0x47   :  { %p964_p4 = scmp.ne.s32.totalorder %s1274_s7, %s963_s16  ;;  %p967_p5 = scmp.lt.u32.totalorder %s963_s16, %s1274_s7 }
  0x49   :  { %p969_p6 = pnand %p967_p5, %p964_p4 }
  0x4b   :  { %972 = shalt.err (!%p969_p6)
}
  0x4c   :  { %s973_s21 = scalar_lea.vmem %s79_s22, 1024  ;;  %p978_p8 = scmp.lt.s32.totalorder %s79_s22, %s79_s22 }
  0x4d   :  { %p974_p7 = scmp.ne.s32.totalorder %s79_s22, %s973_s21  ;;  %p979_p9 = scmp.lt.s32.totalorder %s973_s21, %s973_s21 }
  0x4f   :  { %p980_p10 = por %p979_p9, %p978_p8 }
  0x51   :  { %p981_p11 = pnand %p980_p10, %p974_p7 }
  0x53   :  { %984 = shalt.err (!%p981_p11)
}
  0x54   :  { %84 = dma.hbm_to_vmem [thread:$0]  %s1274_s7, 1024, %s79_s22, [#allocation9], %s1040_s27, %s1040_s27, %s1041_s28  }
  0x55   :  { %s1046_s23 = smov [#allocation11]   ;;  %s985_s25 = scalar_lea.hbm %s1276_s9, 1024 }
  0x56   :  { %s92_s1 = sshll.u32 %s1046_s23, 4  ;;  %p986_p12 = scmp.ne.s32.totalorder %s1276_s9, %s985_s25  ;;  %s93_s1 = int_to_ptr.vmem [resolvable:$true] %s92_s1 }
  0x57   :  { %p989_p13 = scmp.lt.u32.totalorder %s985_s25, %s1276_s9 }
  0x59   :  { %p991_p0 = pnand %p989_p13, %p986_p12 }
  0x5b   :  { %994 = shalt.err (!%p991_p0)
}
  0x5c   :  { %s995_s30 = scalar_lea.vmem %s93_s1, 1024  ;;  %p1000_p2 = scmp.lt.s32.totalorder %s93_s1, %s93_s1 }
  0x5d   :  { %p996_p1 = scmp.ne.s32.totalorder %s93_s1, %s995_s30  ;;  %p1001_p3 = scmp.lt.s32.totalorder %s995_s30, %s995_s30 }
  0x5f   :  { %p1002_p4 = por %p1001_p3, %p1000_p2 }
  0x61   :  { %p1003_p5 = pnand %p1002_p4, %p996_p1 }
  0x63   :  { %1006 = shalt.err (!%p1003_p5)
}
  0x64   :  { %98 = dma.hbm_to_vmem [thread:$0]  %s1276_s9, 1024, %s93_s1, [#allocation12], %s1040_s27, %s1040_s27, %s1041_s28  }
  0x65   :  { %1029 = dma.done.wait [#allocation3], 32  }
  0x66   :  { %1030 = vsyncadd [#allocation3], 4294967264 }
  0x67   :  { %1031 = dma.done.wait [#allocation6], 1152  }
  0x68   :  { %1032 = vsyncadd [#allocation6], 4294966144 }
  0x69   :  { %1033 = dma.done.wait [#allocation9], 2048  }
  0x6a   :  { %1034 = vsyncadd [#allocation9], 4294965248 }
  0x6b   :  { %1035 = dma.done.wait [#allocation12], 1024  }
  0x6c   :  { %1036 = vsyncadd [#allocation12], 4294966272  ;;  %v1047_v0 = vmov 0.0   ;;  %vm1048_vm0 = vmmov 0   ;;  %v838_v1 = vld [vmem:[#allocation5] sm:$0xff]   ;;  %vm137_vm1 = vcmask 130048  }
  0x6d   :  { %741 = vmatprep.subr.bf16.mxu0 %v1047_v0  ;;  %743 = vmatprep.mubr.msk.bf16.mxu0 %vm1048_vm0, %v1047_v0  ;;  %v120_v2 = vld [vmem:[#allocation2] sm:$0x3]  ;;  %v839_v4 = vld [vmem:[#allocation7] sm:$0xff]   ;;  %v840_v5 = vld [vmem:[#allocation7 + $0x8] sm:$0xff]   ;;  %vm633_vm2 = vcmask 1041408  }
  0x6e   :  { %747 = vmatprep.subr.bf16.mxu1 %v1047_v0  ;;  %763 = vmatprep.mubr.msk.bf16.mxu1 %vm1048_vm0, %v1047_v0  ;;  %v121_v3 = vpack.c.bf16 %v120_v2, %v120_v2  ;;  %v841_v6 = vld [vmem:[#allocation7 + $0x10] sm:$0xff]   ;;  %v842_v7 = vld [vmem:[#allocation7 + $0x18] sm:$0xff]   ;;  %v843_v8 = vld [vmem:[#allocation7 + $0x20] sm:$0xff]  }
  0x6f   :  { %742 = vmatpush3.bf16.msra.mxu0 %v838_v1  ;;  %748 = vmatpush3.bf16.msra.mxu1 %v839_v4  ;;  %v844_v9 = vld [vmem:[#allocation7 + $0x28] sm:$0xff]   ;;  %v845_v10 = vld [vmem:[#allocation7 + $0x30] sm:$0xff]   ;;  %v846_v11 = vld [vmem:[#allocation7 + $0x38] sm:$0xff]  }
  0x70   :  { %767 = vmatprep.subr.bf16.mxu0 %v1047_v0  ;;  %749 = vmatprep.subr.bf16.mxu1 %v1047_v0  ;;  %v847_v12 = vld [vmem:[#allocation8] sm:$0xff]   ;;  %v848_v13 = vld [vmem:[#allocation8 + $0x8] sm:$0xff]   ;;  %v849_v14 = vld [vmem:[#allocation8 + $0x10] sm:$0xff]  }
  0x71   :  { %v850_v15 = vld [vmem:[#allocation8 + $0x18] sm:$0xff]   ;;  %v851_v16 = vld [vmem:[#allocation8 + $0x20] sm:$0xff]   ;;  %v852_v17 = vld [vmem:[#allocation8 + $0x28] sm:$0xff]  }
  0x72   :  { %744 = vmatmul.mubr.msk.bf16.vlgmr.msra.gmra.mrb[0].mxu0 %vm137_vm1, %v121_v3  ;;  %v664_v18 = vld [vmem:[%s1269_s2] ss:$0 sm:$0xff]  ;;  %v854_v27 = vld [vmem:[#allocation8 + $0x38] sm:$0xff]   ;;  %v855_v28 = vld [vmem:[#allocation10] sm:$0xff]  }
  0x73   :  { %783 = vmatprep.mubr.msk.bf16.mxu0 %vm1048_vm0, %v1047_v0  ;;  %750 = vmatpush3.bf16.msra.mxu1 %v840_v5  ;;  %v853_v26 = vld [vmem:[#allocation8 + $0x30] sm:$0xff]   ;;  %v856_v29 = vld [vmem:[#allocation10 + $0x8] sm:$0xff]   ;;  %v858_v31 = vld [vmem:[#allocation10 + $0x18] sm:$0xff]  }
  0x74   :  { %751 = vmatprep.subr.bf16.mxu1 %v1047_v0  ;;  %768 = vmatpush3.bf16.msra.mxu0 %v847_v12  ;;  %v857_v30 = vld [vmem:[#allocation10 + $0x10] sm:$0xff]   ;;  %v859_v32 = vld [vmem:[#allocation10 + $0x20] sm:$0xff]   ;;  %v860_v33 = vld [vmem:[#allocation10 + $0x28] sm:$0xff]  }
  0x75   :  { %769 = vmatprep.subr.bf16.mxu0 %v1047_v0  ;;  %v667_v34 = vld [vmem:[%s1271_s4] ss:$0 sm:$0xff]  ;;  %v862_v43 = vld [vmem:[#allocation10 + $0x38] sm:$0xff]   ;;  %v863_v44 = vld [vmem:[#allocation11] sm:$0xff]  }
  0x76   :  { %v861_v42 = vld [vmem:[#allocation10 + $0x30] sm:$0xff]   ;;  %v864_v45 = vld [vmem:[#allocation11 + $0x8] sm:$0xff]   ;;  %v866_v47 = vld [vmem:[#allocation11 + $0x18] sm:$0xff]  }
  0x77   :  { %752 = vmatpush3.bf16.msra.mxu1 %v841_v6  ;;  %v865_v46 = vld [vmem:[#allocation11 + $0x10] sm:$0xff]   ;;  %v867_v48 = vld [vmem:[#allocation11 + $0x20] sm:$0xff]   ;;  %v868_v49 = vld [vmem:[#allocation11 + $0x28] sm:$0xff]  }
  0x78   :  { %753 = vmatprep.subr.bf16.mxu1 %v1047_v0  ;;  %770 = vmatpush3.bf16.msra.mxu0 %v848_v13  ;;  %v676_v50 = vld [vmem:[%s1273_s6] ss:$0 sm:$0xff]  ;;  %v870_v59 = vld [vmem:[#allocation11 + $0x38] sm:$0xff]  }
  0x79   :  { %771 = vmatprep.subr.bf16.mxu0 %v1047_v0  ;;  %v869_v58 = vld [vmem:[#allocation11 + $0x30] sm:$0xff]  }
  0x7a   :  { %v685_v60 = vld [vmem:[%s1275_s8] ss:$0 sm:$0xff]  ;;  %s1049_s8 = smov [#allocation13]  }
  0x7b   :  { %754 = vmatpush3.bf16.msra.mxu1 %v842_v7  ;;  %v694_v5 = vld [vmem:[%s1277_s10] ss:$0 sm:$0xff]  ;;  %s652_s5 = sshll.u32 %s1049_s8, 4  ;;  %s653_s5 = int_to_ptr.vmem [resolvable:$true] %s652_s5 }
  0x7c   :  { %755 = vmatprep.subr.bf16.mxu1 %v1047_v0  ;;  %772 = vmatpush3.bf16.msra.mxu0 %v849_v14  ;;  %s1007_s10 = scalar_lea.vmem %s653_s5, 32  ;;  %p1012_p7 = scmp.lt.s32.totalorder %s653_s5, %s653_s5 }
  0x7d   :  { %773 = vmatprep.subr.bf16.mxu0 %v1047_v0  ;;  %p1008_p6 = scmp.ne.s32.totalorder %s653_s5, %s1007_s10  ;;  %p1013_p8 = scmp.lt.s32.totalorder %s1007_s10, %s1007_s10 }
  0x7f   :  { %756 = vmatpush3.bf16.msra.mxu1 %v843_v8  ;;  %p1014_p9 = por %p1013_p8, %p1012_p7 }
  0x80   :  { %757 = vmatprep.subr.bf16.mxu1 %v1047_v0  ;;  %774 = vmatpush3.bf16.msra.mxu0 %v850_v15 }
  0x81   :  { %775 = vmatprep.subr.bf16.mxu0 %v1047_v0  ;;  %p1015_p10 = pnand %p1014_p9, %p1008_p6 }
  0x83   :  { %758 = vmatpush3.bf16.msra.mxu1 %v844_v9 }
  0x84   :  { %759 = vmatprep.subr.bf16.mxu1 %v1047_v0  ;;  %776 = vmatpush3.bf16.msra.mxu0 %v851_v16 }
  0x85   :  { %777 = vmatprep.subr.bf16.mxu0 %v1047_v0 }
  0x87   :  { %760 = vmatpush3.bf16.msra.mxu1 %v845_v10 }
  0x88   :  { %761 = vmatprep.subr.bf16.mxu1 %v1047_v0  ;;  %778 = vmatpush3.bf16.msra.mxu0 %v852_v17 }
  0x89   :  { %779 = vmatprep.subr.bf16.mxu0 %v1047_v0 }
  0x8b   :  { %762 = vmatpush3.bf16.msra.mxu1 %v846_v11 }
  0x8c   :  { %787 = vmatprep.subr.bf16.mxu1 %v1047_v0  ;;  %780 = vmatpush3.bf16.msra.mxu0 %v853_v26 }
  0x8d   :  { %781 = vmatprep.subr.bf16.mxu0 %v1047_v0 }
  0x90   :  { %782 = vmatpush3.bf16.msra.mxu0 %v854_v27 }
  0x91   :  { %807 = vmatprep.subr.bf16.mxu0 %v1047_v0 }
 0x145   :  { %v175_v19 = vpop.f32.mrb[0].mxu0 }
 0x146   :  { %v176_v20 = vadd.f32 %v664_v18, %v175_v19  ;;  %v745_v21 = vpop.f32.mrb[1].mxu0 }
 0x147   :  { %v178_v22 = vpop.f32.mrb[2].mxu0 }
 0x148   :  { %v181_v23 = vmax.f32 %v176_v20, 0.0  ;;  %v746_v24 = vpop.f32.mrb[3].mxu0 }
 0x14a   :  { %v182_v25 = vpack.c.bf16 %v181_v23, %v181_v23 }
 0x14c   :  { %764 = vmatmul.mubr.bf16.vlgmr.msra.gmra.mrb[0].mxu1 %v182_v25 }
 0x14d   :  { %803 = vmatprep.mubr.msk.bf16.mxu1 %vm1048_vm0, %v1047_v0  ;;  %788 = vmatpush3.bf16.msra.mxu1 %v855_v28 }
 0x14e   :  { %789 = vmatprep.subr.bf16.mxu1 %v1047_v0 }
 0x151   :  { %790 = vmatpush3.bf16.msra.mxu1 %v856_v29 }
 0x152   :  { %791 = vmatprep.subr.bf16.mxu1 %v1047_v0 }
 0x155   :  { %792 = vmatpush3.bf16.msra.mxu1 %v857_v30 }
 0x156   :  { %793 = vmatprep.subr.bf16.mxu1 %v1047_v0 }
 0x159   :  { %794 = vmatpush3.bf16.msra.mxu1 %v858_v31 }
 0x15a   :  { %795 = vmatprep.subr.bf16.mxu1 %v1047_v0 }
 0x15d   :  { %796 = vmatpush3.bf16.msra.mxu1 %v859_v32 }
 0x15e   :  { %797 = vmatprep.subr.bf16.mxu1 %v1047_v0 }
 0x161   :  { %798 = vmatpush3.bf16.msra.mxu1 %v860_v33 }
 0x162   :  { %799 = vmatprep.subr.bf16.mxu1 %v1047_v0 }
 0x165   :  { %800 = vmatpush3.bf16.msra.mxu1 %v861_v42 }
 0x166   :  { %801 = vmatprep.subr.bf16.mxu1 %v1047_v0 }
 0x169   :  { %802 = vmatpush3.bf16.msra.mxu1 %v862_v43 }
 0x21f   :  { %v288_v35 = vpop.f32.mrb[0].mxu1 }
 0x220   :  { %v289_v36 = vadd.f32 %v667_v34, %v288_v35  ;;  %v765_v37 = vpop.f32.mrb[1].mxu1 }
 0x221   :  { %v291_v38 = vpop.f32.mrb[2].mxu1 }
 0x222   :  { %v294_v39 = vmax.f32 %v289_v36, 0.0  ;;  %v766_v40 = vpop.f32.mrb[3].mxu1 }
 0x224   :  { %v295_v41 = vpack.c.bf16 %v294_v39, %v294_v39 }
 0x226   :  { %784 = vmatmul.mubr.bf16.vlgmr.msra.gmra.mrb[4].mxu0 %v295_v41 }
 0x227   :  { %823 = vmatprep.mubr.msk.bf16.mxu0 %vm1048_vm0, %v1047_v0  ;;  %808 = vmatpush3.bf16.msra.mxu0 %v863_v44 }
 0x228   :  { %809 = vmatprep.subr.bf16.mxu0 %v1047_v0 }
 0x22b   :  { %810 = vmatpush3.bf16.msra.mxu0 %v864_v45 }
 0x22c   :  { %811 = vmatprep.subr.bf16.mxu0 %v1047_v0 }
 0x22f   :  { %812 = vmatpush3.bf16.msra.mxu0 %v865_v46 }
 0x230   :  { %813 = vmatprep.subr.bf16.mxu0 %v1047_v0 }
 0x233   :  { %814 = vmatpush3.bf16.msra.mxu0 %v866_v47 }
 0x234   :  { %815 = vmatprep.subr.bf16.mxu0 %v1047_v0 }
 0x237   :  { %816 = vmatpush3.bf16.msra.mxu0 %v867_v48 }
 0x238   :  { %817 = vmatprep.subr.bf16.mxu0 %v1047_v0 }
 0x23b   :  { %818 = vmatpush3.bf16.msra.mxu0 %v868_v49 }
 0x23c   :  { %819 = vmatprep.subr.bf16.mxu0 %v1047_v0 }
 0x23f   :  { %820 = vmatpush3.bf16.msra.mxu0 %v869_v58 }
 0x240   :  { %821 = vmatprep.subr.bf16.mxu0 %v1047_v0 }
 0x243   :  { %822 = vmatpush3.bf16.msra.mxu0 %v870_v59 }
 0x2f9   :  { %v401_v51 = vpop.f32.mrb[4].mxu0 }
 0x2fa   :  { %v402_v52 = vadd.f32 %v676_v50, %v401_v51  ;;  %v785_v53 = vpop.f32.mrb[5].mxu0 }
 0x2fb   :  { %v404_v54 = vpop.f32.mrb[6].mxu0 }
 0x2fc   :  { %v407_v55 = vmax.f32 %v402_v52, 0.0  ;;  %v786_v56 = vpop.f32.mrb[7].mxu0 }
 0x2fe   :  { %v408_v57 = vpack.c.bf16 %v407_v55, %v407_v55 }
 0x300   :  { %804 = vmatmul.mubr.bf16.vlgmr.msra.gmra.mrb[4].mxu1 %v408_v57 }
 0x3d3   :  { %v514_v61 = vpop.f32.mrb[4].mxu1 }
 0x3d4   :  { %v515_v62 = vadd.f32 %v685_v60, %v514_v61  ;;  %v805_v63 = vpop.f32.mrb[5].mxu1 }
 0x3d5   :  { %v517_v1 = vpop.f32.mrb[6].mxu1 }
 0x3d6   :  { %v520_v2 = vmax.f32 %v515_v62, 0.0  ;;  %v806_v3 = vpop.f32.mrb[7].mxu1 }
 0x3d8   :  { %v521_v4 = vpack.c.bf16 %v520_v2, %v520_v2 }
 0x3da   :  { %824 = vmatmul.mubr.bf16.vlgmr.msra.gmra.mrb[8].mxu0 %v521_v4 }
 0x4ad   :  { %v627_v6 = vpop.f32.mrb[8].mxu0 }
 0x4ae   :  { %v628_v0 = vadd.f32 %v694_v5, %v627_v6  ;;  %v825_v7 = vpop.f32.mrb[9].mxu0 }
 0x4af   :  { %v630_v8 = vpop.f32.mrb[10].mxu0 }
 0x4b0   :  { %v826_v9 = vpop.f32.mrb[11].mxu0  ;;  %v634_v10 = vsel %vm633_vm2, %v628_v0, -inf }
 0x4b1   :  { %635 = vmax.xlane.f32.xlu0 %v634_v10 }
 0x53e   :  { %v636_v11 = vpop.xlane.xlu0 %635 }
 0x53f   :  { %v637_v12 = vsub.f32 %v628_v0, %v636_v11 }
 0x541   :  { %v638_v13 = vmul.f32 1.442695, %v637_v12 }
 0x543   :  { %871 = vpow2.f32 %v638_v13 }
 0x54d   :  { %v872_v14 = vpop.eup %871 }
 0x54e   :  { %v640_v15 = vsel %vm633_vm2, %v872_v14, 0.0 }
 0x54f   :  { %641 = vadd.xlane.f32.xlu0 %v640_v15 }
 0x5dc   :  { %v642_v16 = vpop.xlane.xlu0 %641 }
 0x5dd   :  { %873 = vrcp.f32 %v642_v16 }
 0x5e7   :  { %v874_v17 = vpop.eup %873 }
 0x5e8   :  { %v644_v18 = vmul.f32 %v874_v17, %v872_v14 }
 0x5ea   :  { %645 = vst [vmem:[#allocation13] sm:$0x3] %v644_v18 }
 0x5eb   :  { %1018 = shalt.err (!%p1015_p10)
}
 0x5ec   :  { %s1019_s21 = scalar_lea.hbm %s1278_s11, 32 }
 0x5ed   :  { %p1020_p11 = scmp.ne.s32.totalorder %s1278_s11, %s1019_s21  ;;  %p1023_p12 = scmp.lt.u32.totalorder %s1019_s21, %s1278_s11 }
 0x5ef   :  { %p1025_p13 = pnand %p1023_p12, %p1020_p11 }
 0x5f1   :  { %1028 = shalt.err (!%p1025_p13)
}
 0x5f2   :  { %655 = dma.vmem_to_hbm [thread:$0]  %s653_s5, 32, %s1278_s11, [#allocation4]  }
 0x5f3   :  { %1037 = dma.done.wait [#allocation4], 32  }
 0x5f4   :  { %1038 = vsyncadd [#allocation4], 4294967264 }
 0x5f5   :  { %659 = vsyncpa [#allocation3], 1 }
 0x5f6   :  { %660 = vsyncpa [#allocation6], 1 }
 0x5f7   :  { %661 = vsyncpa [#allocation9], 1 }
 0x5f8   :  { %662 = vsyncpa [#allocation12], 1 }
 0x5f9   :  { %663 = vsyncpa [#allocation4], 1 }

</bundles_post_ra>
